<compile_context>
chip_gen: v7x
topology: tpu7x:2x2x1
jax: 0.10.0
libtpu: 0.0.40
codegen_flags: <defaults>
</compile_context>

<pallas_src>
import jax
import jax.numpy as jnp
from jax.experimental import pallas as pl
from jax.experimental.pallas import tpu as pltpu

LANE = 128       # TPU lane width (fast axis of a vreg)
SUBLANE = 8      # f32 sublane packing
NEG_BIG = -1e30  # effectively -inf for masking padded class lanes


def _round_up(n, m):
    return (n + m - 1) // m * m


def covidnet_kernel(x_ref, w1_ref, b1_ref, w2_ref, b2_ref, out_ref):
    """Fused fc1 -> ReLU -> fc2 -> softmax on one batch tile.

    Kernel-visible shapes (compute is lane-dense; the store is narrow):
      x_ref  : (Bt, D_in)
      w1_ref : (D_in, Hp)   hidden padded to a multiple of 128
      b1_ref : (1, Hp)
      w2_ref : (Hp, Cp)     classes padded to a multiple of 128
      b2_ref : (1, Cp)      padded class lanes carry -1e30
      out_ref: (Bt, Cout)   Cout = classes rounded up to 8; real classes in [:, :C]
    """
    x = x_ref[...]
    h = jnp.dot(x, w1_ref[...], preferred_element_type=jnp.float32) + b1_ref[...]
    h = jnp.maximum(h, 0.0)
    logits = jnp.dot(h, w2_ref[...], preferred_element_type=jnp.float32) + b2_ref[...]

    # Numerically stable softmax over the class axis.  Padded class lanes carry
    # a -1e30 bias, so they never win the max and exp underflows them to 0.
    m = jnp.max(logits, axis=-1, keepdims=True)
    e = jnp.exp(logits - m)
    denom = jnp.sum(e, axis=-1, keepdims=True)
    # EUP approximate reciprocal (otherwise-idle slot) + one Newton step
    # keeps full f32 accuracy (row sums ~1 to 1e-7).
    inv = pl.reciprocal(denom, approx=True)
    inv = inv * (2.0 - denom * inv)
    probs = e * inv
    # Only the narrow real-class slab is written back to HBM.
    out_ref[...] = probs[:, : out_ref.shape[-1]].astype(out_ref.dtype)


def prepare_params(w1, b1, w2, b2):
    """Zero-pad CovidNet parameters to lane-dense shapes (done once, at trace time).

    Inputs use the x @ W + b convention (already transposed vs. torch.nn.Linear):
      w1: (D_in, H), b1: (H,) or (1, H), w2: (H, C), b2: (C,) or (1, C)
    Returns ((w1p, b1p, w2p, b2p), (d_in, hidden, num_classes)).
    """
    d_in, hidden = w1.shape
    _, num_classes = w2.shape
    hp = _round_up(hidden, LANE)
    cp = _round_up(num_classes, LANE)

    w1p = jnp.zeros((d_in, hp), jnp.float32).at[:, :hidden].set(w1)
    b1p = jnp.zeros((1, hp), jnp.float32).at[:, :hidden].set(
        jnp.reshape(b1, (1, hidden)))
    w2p = jnp.zeros((hp, cp), jnp.float32).at[:hidden, :num_classes].set(w2)
    # Huge negative bias on padded class lanes -> softmax ignores them.
    b2p = jnp.full((1, cp), NEG_BIG, jnp.float32).at[:, :num_classes].set(
        jnp.reshape(b2, (1, num_classes)))
    return (w1p, b1p, w2p, b2p), (d_in, hidden, num_classes)


def covidnet_forward(x, padded_params, dims, *, b_tile_max=4096,
                     grid_batch_threshold=512):
    """x: (B, D_in) f32; padded params / dims from prepare_params.

    Returns (B, num_classes) softmax probabilities.
    """
    w1p, b1p, w2p, b2p = padded_params
    d_in, hidden, num_classes = dims
    b = x.shape[0]
    cp_out = _round_up(num_classes, SUBLANE)   # narrow output width stored to HBM

    # Advisory cost model using the REAL (unpadded) dimensions.
    cost = pl.CostEstimate(
        flops=2 * b * (d_in * hidden + hidden * num_classes),
        transcendentals=b * num_classes,
        bytes_accessed=4 * (b * d_in
                            + d_in * hidden + hidden
                            + hidden * num_classes + num_classes
                            + b * cp_out),
    )

    if b <= grid_batch_threshold:
        # Small batch: single un-gridded call, all operands resident in VMEM.
        out = pl.pallas_call(
            covidnet_kernel,
            out_shape=jax.ShapeDtypeStruct((b, cp_out), jnp.float32),
            in_specs=[pl.BlockSpec(memory_space=pltpu.MemorySpace.VMEM)] * 5,
            out_specs=pl.BlockSpec(memory_space=pltpu.MemorySpace.VMEM),
            cost_estimate=cost,
        )(x, w1p, b1p, w2p, b2p)
    else:
        # Batch-tiled path.  Tile is as large as allowed (amortizes per-step
        # overhead) while guaranteeing >= 4 grid steps so v7x's two TensorCores
        # both get work.  No padded copy of x: the last block may be ragged;
        # its out-of-range rows hold undefined data but are never written back.
        b_tile = min(b_tile_max, _round_up(pl.cdiv(b, 4), SUBLANE))
        grid = (pl.cdiv(b, b_tile),)
        out = pl.pallas_call(
            covidnet_kernel,
            out_shape=jax.ShapeDtypeStruct((b, cp_out), jnp.float32),
            grid_spec=pltpu.PrefetchScalarGridSpec(
                num_scalar_prefetch=0,
                grid=grid,
                in_specs=[
                    pl.BlockSpec((b_tile, d_in), lambda i: (i, 0)),
                    # Weights/biases: constant index_map -> VMEM-resident
                    # across all grid steps (fetched once).
                    pl.BlockSpec(w1p.shape, lambda i: (0, 0)),
                    pl.BlockSpec(b1p.shape, lambda i: (0, 0)),
                    pl.BlockSpec(w2p.shape, lambda i: (0, 0)),
                    pl.BlockSpec(b2p.shape, lambda i: (0, 0)),
                ],
                out_specs=pl.BlockSpec((b_tile, cp_out), lambda i: (i, 0)),
            ),
            compiler_params=pltpu.CompilerParams(
                dimension_semantics=("parallel",)),
            cost_estimate=cost,
        )(x, w1p, b1p, w2p, b2p)

    # Drop the (zero-valued) padded class lanes.
    return out[:, :num_classes]


def reference_forward(x, w1, b1, w2, b2):
    h = jnp.maximum(x @ w1 + b1, 0.0)
    logits = h @ w2 + b2
    return jax.nn.softmax(logits, axis=1)


if __name__ == "__main__":
    # Shapes consistent with the module: input_size=16, hidden=32, classes=4.
    B, D_IN, HIDDEN, NUM_CLASSES = 8, 16, 32, 4

    key = jax.random.PRNGKey(0)
    kx, k1, k2, k3, k4, kx2 = jax.random.split(key, 6)

    x = jax.random.normal(kx, (B, D_IN), dtype=jnp.float32)

    # Deterministic synthetic parameters (transposed relative to torch.nn.Linear).
    w1 = jax.random.normal(k1, (D_IN, HIDDEN), dtype=jnp.float32) * 0.1
    b1 = jax.random.normal(k2, (1, HIDDEN), dtype=jnp.float32) * 0.1
    w2 = jax.random.normal(k3, (HIDDEN, NUM_CLASSES), dtype=jnp.float32) * 0.1
    b2 = jax.random.normal(k4, (1, NUM_CLASSES), dtype=jnp.float32) * 0.1

    params, dims = prepare_params(w1, b1, w2, b2)

    # Small batch -> un-gridded, fully VMEM-resident path.
    out = jax.block_until_ready(covidnet_forward(x, params, dims))
    ref = reference_forward(x, w1, b1, w2, b2)
    assert out.shape == (B, NUM_CLASSES)
    assert jnp.allclose(out, ref, atol=1e-5, rtol=1e-5), "small-batch mismatch"
    assert jnp.allclose(jnp.sum(out, axis=1), jnp.ones((B,)), atol=1e-5)

    # Larger batch (not a multiple of the tile) -> batch-tiled parallel grid
    # with a ragged boundary block and no padded copy of x.
    B2 = 2000
    x2 = jax.random.normal(kx2, (B2, D_IN), dtype=jnp.float32)
    out2 = jax.block_until_ready(covidnet_forward(x2, params, dims))
    ref2 = reference_forward(x2, w1, b1, w2, b2)
    assert out2.shape == (B2, NUM_CLASSES)
    assert jnp.allclose(out2, ref2, atol=1e-5, rtol=1e-5), "tiled-batch mismatch"
    assert jnp.allclose(jnp.sum(out2, axis=1), jnp.ones((B2,)), atol=1e-5)

    print("KERNEL_OK")
</pallas_src>

<mosaic_0001>
module attributes {stable_mosaic.version = 11 : i64} {
  func.func @covidnet_kernel(%arg0: memref<8x16xf32, #tpu.memory_space<vmem>>, %arg1: memref<16x128xf32, #tpu.memory_space<vmem>>, %arg2: memref<1x128xf32, #tpu.memory_space<vmem>>, %arg3: memref<128x128xf32, #tpu.memory_space<vmem>>, %arg4: memref<1x128xf32, #tpu.memory_space<vmem>>, %arg5: memref<8x8xf32, #tpu.memory_space<vmem>>) attributes {dimension_semantics = [], scalar_prefetch = 0 : i64, scratch_operands = 0 : i64, tpu.core_type = #tpu.core_type<tc>} {
    %c0 = arith.constant 0 : index
    %c0_0 = arith.constant 0 : index
    %0 = vector.load %arg0[%c0, %c0_0] : memref<8x16xf32, #tpu.memory_space<vmem>>, vector<8x16xf32>
    %c0_1 = arith.constant 0 : index
    %c0_2 = arith.constant 0 : index
    %1 = vector.load %arg1[%c0_1, %c0_2] : memref<16x128xf32, #tpu.memory_space<vmem>>, vector<16x128xf32>
    %cst = arith.constant dense<0.000000e+00> : vector<8x128xf32>
    %2 = tpu.matmul %0, %1, %cst {dimension_numbers = #tpu.dot_dimension_numbers<[1], [0], [0], [1], [0, 0, 1, 1], [], []>} : vector<8x16xf32>, vector<16x128xf32>, vector<8x128xf32> -> vector<8x128xf32>
    %c0_3 = arith.constant 0 : index
    %c0_4 = arith.constant 0 : index
    %3 = vector.load %arg2[%c0_3, %c0_4] : memref<1x128xf32, #tpu.memory_space<vmem>>, vector<1x128xf32>
    %4 = vector.broadcast %3 : vector<1x128xf32> to vector<8x128xf32>
    %5 = arith.addf %2, %4 : vector<8x128xf32>
    %cst_5 = arith.constant 0.000000e+00 : f32
    %6 = vector.broadcast %cst_5 : f32 to vector<8x128xf32>
    %7 = arith.maximumf %5, %6 : vector<8x128xf32>
    %c0_6 = arith.constant 0 : index
    %c0_7 = arith.constant 0 : index
    %8 = vector.load %arg3[%c0_6, %c0_7] : memref<128x128xf32, #tpu.memory_space<vmem>>, vector<128x128xf32>
    %cst_8 = arith.constant dense<0.000000e+00> : vector<8x128xf32>
    %9 = tpu.matmul %7, %8, %cst_8 {dimension_numbers = #tpu.dot_dimension_numbers<[1], [0], [0], [1], [0, 0, 1, 1], [], []>} : vector<8x128xf32>, vector<128x128xf32>, vector<8x128xf32> -> vector<8x128xf32>
    %c0_9 = arith.constant 0 : index
    %c0_10 = arith.constant 0 : index
    %10 = vector.load %arg4[%c0_9, %c0_10] : memref<1x128xf32, #tpu.memory_space<vmem>>, vector<1x128xf32>
    %11 = vector.broadcast %10 : vector<1x128xf32> to vector<8x128xf32>
    %12 = arith.addf %9, %11 : vector<8x128xf32>
    %cst_11 = arith.constant dense<0xFF800000> : vector<8xf32>
    %13 = vector.multi_reduction <maximumf>, %12, %cst_11 [1] : vector<8x128xf32> to vector<8xf32>
    %14 = vector.shape_cast %13 : vector<8xf32> to vector<8x1xf32>
    %15 = vector.broadcast %14 : vector<8x1xf32> to vector<8x128xf32>
    %16 = arith.subf %12, %15 : vector<8x128xf32>
    %17 = math.exp %16 : vector<8x128xf32>
    %cst_12 = arith.constant dense<0.000000e+00> : vector<8xf32>
    %18 = vector.multi_reduction <add>, %17, %cst_12 [1] : vector<8x128xf32> to vector<8xf32>
    %19 = vector.shape_cast %18 : vector<8xf32> to vector<8x1xf32>
    %20 = tpu.reciprocal %19 {approx = true} : vector<8x1xf32> -> vector<8x1xf32>
    %21 = arith.mulf %19, %20 : vector<8x1xf32>
    %cst_13 = arith.constant 2.000000e+00 : f32
    %22 = vector.broadcast %cst_13 : f32 to vector<8x1xf32>
    %23 = arith.subf %22, %21 : vector<8x1xf32>
    %24 = arith.mulf %20, %23 : vector<8x1xf32>
    %25 = vector.broadcast %24 : vector<8x1xf32> to vector<8x128xf32>
    %26 = arith.mulf %17, %25 : vector<8x128xf32>
    %27 = vector.extract_strided_slice %26 {offsets = [0, 0], sizes = [8, 8], strides = [1, 1]} : vector<8x128xf32> to vector<8x8xf32>
    %c0_14 = arith.constant 0 : index
    %c0_15 = arith.constant 0 : index
    %28 = vector.load %arg5[%c0_14, %c0_15] : memref<8x8xf32, #tpu.memory_space<vmem>>, vector<8x8xf32>
    tpu.vector_store %arg5[%c0_14, %c0_15], %27 {strides = array<i32>} : memref<8x8xf32, #tpu.memory_space<vmem>>, vector<8x8xf32>,
    return
  }
}

</mosaic_0001>

<bundles_post_ra>
// kernel: tpu_custom_call.1
= control target key start
LH: loop header
LB: loop body
LE: loop exit
PB: predicated region body
PF: predicated region fallthrough
CT: control target
= control target key end

     0   :  { %10 = vsyncpa [#allocation3], 0  ;;  %s566_s0 = inlined_call_operand.hbm [shape: f32[8,16], index: 0, kind: input, shape index: {}]   ;;  %s567_s1 = inlined_call_operand.hbm [shape: f32[16,128], index: 1, kind: input, shape index: {}]   ;;  %s568_s2 = inlined_call_operand.vmem [shape: f32[1,128], index: 2, kind: input, shape index: {}]   ;;  %s569_s3 = inlined_call_operand.hbm [shape: f32[128,128], index: 3, kind: input, shape index: {}]   ;;  %s570_s4 = inlined_call_operand.vmem [shape: f32[1,128], index: 4, kind: input, shape index: {}]   ;;  %s571_s5 = inlined_call_operand.hbm [shape: f32[8,8], index: 5, kind: output, shape index: {}]  }
   0x1   :  { %11 = vsyncpa [#allocation6], 0 }
   0x2   :  { %12 = vsyncpa [#allocation4], 0  ;;  %s467_s18 = smov [#allocation5]   ;;  %s373_s22 = scalar_lea.hbm %s567_s1, 256 }
   0x3   :  { %s28_s19 = sshll.u32 %s467_s18, 4  ;;  %p374_p0 = scmp.ne.s32.totalorder %s567_s1, %s373_s22  ;;  %s29_s19 = int_to_ptr.vmem [resolvable:$true] %s28_s19 }
   0x4   :  { %p377_p1 = scmp.lt.u32.totalorder %s373_s22, %s567_s1 }
   0x6   :  { %p379_p2 = pnand %p377_p1, %p374_p0 }
   0x8   :  { %382 = shalt.err (!%p379_p2)
}
   0x9   :  { %s383_s27 = scalar_lea.vmem %s29_s19, 256  ;;  %p388_p4 = scmp.lt.s32.totalorder %s29_s19, %s29_s19 }
   0xa   :  { %p384_p3 = scmp.ne.s32.totalorder %s29_s19, %s383_s27  ;;  %p389_p5 = scmp.lt.s32.totalorder %s383_s27, %s383_s27 }
   0xc   :  { %p390_p6 = por %p389_p5, %p388_p4 }
   0xe   :  { %p391_p7 = pnand %p390_p6, %p384_p3 }
  0x10   :  { %394 = shalt.err (!%p391_p7)
}
  0x11   :  { %s468_s28 = smov 128   ;;  %s469_s29 = smov 8  }
  0x12   :  { %34 = dma.hbm_to_vmem [thread:$0]  %s567_s1, 256, %s29_s19, [#allocation6], %s468_s28, %s468_s28, %s469_s29  }
  0x13   :  { %s470_s7 = smov [#allocation2]   ;;  %s471_s9 = smov [#allocation7]  }
  0x14   :  { %s19_s8 = sshll.u32 %s470_s7, 4  ;;  %s42_s10 = sshll.u32 %s471_s9, 4  ;;  %s20_s8 = int_to_ptr.vmem [resolvable:$true] %s19_s8  ;;  %s43_s10 = int_to_ptr.vmem [resolvable:$true] %s42_s10 }
  0x15   :  { %s395_s13 = scalar_lea.hbm %s566_s0, 128 }
  0x16   :  { %p396_p8 = scmp.ne.s32.totalorder %s566_s0, %s395_s13  ;;  %p399_p9 = scmp.lt.u32.totalorder %s395_s13, %s566_s0 }
  0x18   :  { %p401_p10 = pnand %p399_p9, %p396_p8 }
  0x1a   :  { %404 = shalt.err (!%p401_p10)
}
  0x1b   :  { %s405_s1 = scalar_lea.vmem %s20_s8, 128  ;;  %p410_p12 = scmp.lt.s32.totalorder %s20_s8, %s20_s8 }
  0x1c   :  { %p406_p11 = scmp.ne.s32.totalorder %s20_s8, %s405_s1  ;;  %p411_p13 = scmp.lt.s32.totalorder %s405_s1, %s405_s1 }
  0x1e   :  { %p412_p0 = por %p411_p13, %p410_p12 }
  0x20   :  { %p413_p1 = pnand %p412_p0, %p406_p11 }
  0x22   :  { %416 = shalt.err (!%p413_p1)
}
  0x23   :  { %22 = dma.hbm_to_vmem [thread:$0]  %s566_s0, 128, %s20_s8, [#allocation3]  }
  0x24   :  { %s417_s22 = scalar_lea.hbm %s569_s3, 2048 }
  0x25   :  { %p418_p2 = scmp.ne.s32.totalorder %s569_s3, %s417_s22  ;;  %p421_p3 = scmp.lt.u32.totalorder %s417_s22, %s569_s3 }
  0x27   :  { %p423_p4 = pnand %p421_p3, %p418_p2 }
  0x29   :  { %426 = shalt.err (!%p423_p4)
}
  0x2a   :  { %s427_s27 = scalar_lea.vmem %s43_s10, 2048  ;;  %p432_p6 = scmp.lt.s32.totalorder %s43_s10, %s43_s10 }
  0x2b   :  { %p428_p5 = scmp.ne.s32.totalorder %s43_s10, %s427_s27  ;;  %p433_p7 = scmp.lt.s32.totalorder %s427_s27, %s427_s27 }
  0x2d   :  { %p434_p8 = por %p433_p7, %p432_p6 }
  0x2f   :  { %p435_p9 = pnand %p434_p8, %p428_p5 }
  0x31   :  { %438 = shalt.err (!%p435_p9)
}
  0x32   :  { %48 = dma.hbm_to_vmem [thread:$0]  %s569_s3, 2048, %s43_s10, [#allocation6], %s468_s28, %s468_s28, %s469_s29  }
  0x33   :  { %461 = dma.done.wait [#allocation3], 128  }
  0x34   :  { %462 = vsyncadd [#allocation3], 4294967168 }
  0x35   :  { %463 = dma.done.wait [#allocation6], 2304  }
  0x36   :  { %464 = vsyncadd [#allocation6], 4294964992  ;;  %v472_v0 = vmov 0.0|0.0   ;;  %vm473_vm0 = vmmov 0   ;;  %v474_v1 = vmov 0.0   ;;  %v61_v2 = vld [vmem:[#allocation5] sm:$0xff] }
  0x37   :  { %333 = vmatprep.subr.bf16.mxu0 %v472_v0  ;;  %295 = vmatprep.mubr.msk.f32.mxu0 %vm473_vm0, %v474_v1  ;;  %v62_v3 = vld [vmem:[#allocation5 + $0x8] sm:$0xff]  ;;  %v145_v5 = vld [vmem:[#allocation7] sm:$0xff]  ;;  %v146_v6 = vld [vmem:[#allocation7 + $0x8] sm:$0xff]  ;;  %vm70_vm1 = vcmask 130048   ;;  %vm250_vm2 = vcmask 64512  }
  0x38   :  { %336 = vmatprep.subr.bf16.mxu1 %v472_v0  ;;  %330 = vmatprep.mubr.msk.f32.mxu1 %vm473_vm0, %v474_v1  ;;  %v334_v4 = vpack.c.bf16 %v62_v3, %v61_v2  ;;  %v147_v7 = vld [vmem:[#allocation7 + $0x10] sm:$0xff]  ;;  %v337_v8 = vpack.c.bf16 %v146_v6, %v145_v5  ;;  %v148_v9 = vld [vmem:[#allocation7 + $0x18] sm:$0xff]  ;;  %v60_v10 = vld [vmem:[#allocation2] sm:$0xff] }
  0x39   :  { %v340_v11 = vpack.c.bf16 %v148_v9, %v147_v7  ;;  %v149_v12 = vld [vmem:[#allocation7 + $0x20] sm:$0xff]  ;;  %v150_v13 = vld [vmem:[#allocation7 + $0x28] sm:$0xff]  ;;  %v151_v15 = vld [vmem:[#allocation7 + $0x30] sm:$0xff] }
  0x3a   :  { %335 = vmatpush3.bf16.msra.mxu0 %v334_v4  ;;  %338 = vmatpush3.bf16.msra.mxu1 %v337_v8  ;;  %v343_v14 = vpack.c.bf16 %v150_v13, %v149_v12  ;;  %v152_v16 = vld [vmem:[#allocation7 + $0x38] sm:$0xff]  ;;  %v153_v18 = vld [vmem:[#allocation7 + $0x40] sm:$0xff]  ;;  %v154_v19 = vld [vmem:[#allocation7 + $0x48] sm:$0xff] }
  0x3b   :  { %339 = vmatprep.subr.bf16.mxu1 %v472_v0  ;;  %v346_v17 = vpack.c.bf16 %v152_v16, %v151_v15  ;;  %v349_v20 = vpack.c.bf16 %v154_v19, %v153_v18  ;;  %v155_v21 = vld [vmem:[#allocation7 + $0x50] sm:$0xff]  ;;  %v156_v22 = vld [vmem:[#allocation7 + $0x58] sm:$0xff]  ;;  %v157_v24 = vld [vmem:[#allocation7 + $0x60] sm:$0xff] }
  0x3c   :  { %v352_v23 = vpack.c.bf16 %v156_v22, %v155_v21  ;;  %v158_v25 = vld [vmem:[#allocation7 + $0x68] sm:$0xff]  ;;  %v159_v27 = vld [vmem:[#allocation7 + $0x70] sm:$0xff]  ;;  %v160_v28 = vld [vmem:[#allocation7 + $0x78] sm:$0xff] }
  0x3d   :  { %296 = vmatmul.mubr.msk.f32.vlgmr.msra.gmra.mrb[0].mxu0 %vm70_vm1, %v60_v10  ;;  %v355_v26 = vpack.c.bf16 %v158_v25, %v157_v24  ;;  %v358_v29 = vpack.c.bf16 %v160_v28, %v159_v27  ;;  %v268_v30 = vld [vmem:[%s568_s2] ss:$0 sm:$0xff]  ;;  %s475_s2 = smov [#allocation8]  }
  0x3e   :  { %341 = vmatpush3.bf16.msra.mxu1 %v340_v11  ;;  %v270_v35 = vld [vmem:[%s570_s4] ss:$0 sm:$0xff]  ;;  %s258_s7 = sshll.u32 %s475_s2, 4  ;;  %s259_s7 = int_to_ptr.vmem [resolvable:$true] %s258_s7 }
  0x3f   :  { %342 = vmatprep.subr.bf16.mxu1 %v472_v0  ;;  %s439_s4 = scalar_lea.vmem %s259_s7, 128  ;;  %p444_p11 = scmp.lt.s32.totalorder %s259_s7, %s259_s7 }
  0x40   :  { %p440_p10 = scmp.ne.s32.totalorder %s259_s7, %s439_s4  ;;  %p445_p12 = scmp.lt.s32.totalorder %s439_s4, %s439_s4 }
  0x42   :  { %344 = vmatpush3.bf16.msra.mxu1 %v343_v14  ;;  %p446_p13 = por %p445_p12, %p444_p11 }
  0x43   :  { %345 = vmatprep.subr.bf16.mxu1 %v472_v0 }
  0x44   :  { %p447_p0 = pnand %p446_p13, %p440_p10 }
  0x46   :  { %347 = vmatpush3.bf16.msra.mxu1 %v346_v17 }
  0x47   :  { %348 = vmatprep.subr.bf16.mxu1 %v472_v0 }
  0x4a   :  { %350 = vmatpush3.bf16.msra.mxu1 %v349_v20 }
  0x4b   :  { %351 = vmatprep.subr.bf16.mxu1 %v472_v0 }
  0x4e   :  { %353 = vmatpush3.bf16.msra.mxu1 %v352_v23 }
  0x4f   :  { %354 = vmatprep.subr.bf16.mxu1 %v472_v0 }
  0x52   :  { %356 = vmatpush3.bf16.msra.mxu1 %v355_v26 }
  0x53   :  { %357 = vmatprep.subr.bf16.mxu1 %v472_v0 }
  0x56   :  { %359 = vmatpush3.bf16.msra.mxu1 %v358_v29 }
 0x110   :  { %v140_v31 = vpop.f32.mrb[0].mxu0 }
 0x111   :  { %v141_v32 = vadd.f32 %v268_v30, %v140_v31  ;;  %v297_v33 = vpop.f32.mrb[1].mxu0 }
 0x113   :  { %v144_v34 = vmax.f32 %v141_v32, 0.0 }
 0x115   :  { %331 = vmatmul.mubr.f32.vlgmr.msra.gmra.mrb[0].mxu1 %v144_v34 }
 0x1e8   :  { %v234_v36 = vpop.f32.mrb[0].mxu1 }
 0x1e9   :  { %v235_v37 = vadd.f32 %v270_v35, %v234_v36  ;;  %v332_v38 = vpop.f32.mrb[1].mxu1 }
 0x1eb   :  { %238 = vmax.xlane.f32.xlu0 %v235_v37 }
 0x278   :  { %v239_v39 = vpop.xlane.xlu0 %238 }
 0x279   :  { %v240_v40 = vsub.f32 %v235_v37, %v239_v39 }
 0x27b   :  { %v241_v41 = vmul.f32 1.442695, %v240_v40 }
 0x27d   :  { %369 = vpow2.f32 %v241_v41 }
 0x287   :  { %v370_v42 = vpop.eup %369 }
 0x288   :  { %243 = vadd.xlane.f32.xlu0 %v370_v42 }
 0x315   :  { %v244_v43 = vpop.xlane.xlu0 %243 }
 0x316   :  { %371 = vrcp.f32 %v244_v43 }
 0x320   :  { %v372_v44 = vpop.eup %371 }
 0x321   :  { %v246_v45 = vmul.f32 %v372_v44, %v244_v43 }
 0x323   :  { %v247_v46 = vsub.f32 2.0, %v246_v45 }
 0x325   :  { %v248_v47 = vmul.f32 %v372_v44, %v247_v46 }
 0x327   :  { %v249_v48 = vmul.f32 %v370_v42, %v248_v47 }
 0x329   :  { %251 = vst.msk [vmem:[#allocation8] sm:$0xff] %vm250_vm2, %v249_v48 }
 0x32a   :  { %450 = shalt.err (!%p447_p0)
}
 0x32b   :  { %s451_s10 = scalar_lea.hbm %s571_s5, 128 }
 0x32c   :  { %p452_p1 = scmp.ne.s32.totalorder %s571_s5, %s451_s10  ;;  %p455_p2 = scmp.lt.u32.totalorder %s451_s10, %s571_s5 }
 0x32e   :  { %p457_p3 = pnand %p455_p2, %p452_p1 }
 0x330   :  { %460 = shalt.err (!%p457_p3)
}
 0x331   :  { %261 = dma.vmem_to_hbm [thread:$0]  %s259_s7, 128, %s571_s5, [#allocation4]  }
 0x332   :  { %465 = dma.done.wait [#allocation4], 128  }
 0x333   :  { %466 = vsyncadd [#allocation4], 4294967168 }
 0x334   :  { %265 = vsyncpa [#allocation3], 1 }
 0x335   :  { %266 = vsyncpa [#allocation6], 1 }
 0x336   :  { %267 = vsyncpa [#allocation4], 1 }

</bundles_post_ra>
